<compile_context>
chip_gen: v5e
topology: v5e:2x2
jax: 0.10.0
libtpu: 0.0.40
codegen_flags: <defaults>
</compile_context>

<pallas_src>
import functools

import jax
import jax.numpy as jnp
from jax import lax
from jax.experimental import pallas as pl
from jax.experimental.pallas import tpu as pltpu


def _attention_kernel(q_ref, k_ref, v_ref,
                      wq_ref, bq_ref, wk_ref, bk_ref, wv_ref, bv_ref,
                      ctx_ref, attn_ref,
                      k_proj, v_proj):
    Bt, tq, D = q_ref.shape
    _, n_v, _ = k_ref.shape
    dk = wq_ref.shape[1]
    dv = wv_ref.shape[1]

    # --- K/V projections: only on the first q step of each batch block. ---
    @pl.when(pl.program_id(1) == 0)
    def _():
        k_in = k_ref[...].reshape(Bt * n_v, D)          # bf16 (cast in wrapper)
        v_in = v_ref[...].reshape(Bt * n_v, D)
        keys = jnp.dot(k_in, wk_ref[...],
                       preferred_element_type=jnp.float32) + bk_ref[...]
        values = jnp.dot(v_in, wv_ref[...],
                         preferred_element_type=jnp.float32) + bv_ref[...]
        k_proj[...] = keys.reshape(Bt, n_v, dk).astype(jnp.bfloat16)
        v_proj[...] = values.reshape(Bt, n_v, dv).astype(jnp.bfloat16)

    # --- Q projection (1/sqrt(dk) already folded into Wq/bq in wrapper). ---
    q_in = q_ref[...].reshape(Bt * tq, D)
    queries = jnp.dot(q_in, wq_ref[...],
                      preferred_element_type=jnp.float32) + bq_ref[...]
    q3 = queries.reshape(Bt, tq, dk).astype(jnp.bfloat16)

    # Scores: contract the last dims of Q and projected K directly
    # (no keys.T -> no XLU transpose pass).
    scores = lax.dot_general(
        q3, k_proj[...],
        dimension_numbers=(((2,), (2,)), ((0,), (0,))),
        preferred_element_type=jnp.float32)              # (Bt, tq, n_v)

    # Numerically-stable softmax; exact normalization so returned weights
    # sum to 1 per row.
    m = jnp.max(scores, axis=-1, keepdims=True)
    e = jnp.exp(scores - m)
    denom = jnp.sum(e, axis=-1, keepdims=True)
    attn = e / denom

    # TODO(synk): training-mode dropout on attention weights is not applied
    # here; eval-mode dropout is identity.

    context = lax.dot_general(
        attn.astype(jnp.bfloat16), v_proj[...],
        dimension_numbers=(((2,), (1,)), ((0,), (0,))),
        preferred_element_type=jnp.float32)              # (Bt, tq, dv)

    ctx_ref[...] = context.astype(ctx_ref.dtype)
    attn_ref[...] = attn.astype(attn_ref.dtype)


def _largest_divisor_leq(n, cap):
    cap = max(1, min(n, cap))
    for d in range(cap, 0, -1):
        if n % d == 0:
            return d
    return 1


def _choose_q_tile(n_q):
    # Target tall q tiles (up to 512 rows) so projection / scores matmuls
    # feed the MXU a tall LHS; keep the sublane (8) constraint.
    if n_q <= 512:
        return n_q
    for t in range(512, 0, -8):
        if n_q % t == 0:
            return t
    return n_q


def _choose_batch_tile(B, n_q, tq, n_v):
    # Prefer Bt=1 once the q tile alone is tall enough for the MXU
    # (batched dot_general runs Bt separate small-LHS passes otherwise).
    if tq >= 256:
        return 1
    # Only merge batch elements when the in-kernel 3D<->2D reshapes stay
    # layout-trivial for bf16 sublane packing (multiples of 16).
    if tq % 16 != 0 or n_v % 16 != 0:
        return 1
    target_rows = 512
    bt = _largest_divisor_leq(B, max(1, target_rows // tq))
    # Keep >= 2 parallel grid steps when possible (megacore / v7x 2 TCs).
    while bt > 1 and (B // bt) < 2:
        bt = _largest_divisor_leq(B, bt - 1)
    return bt


def _vmem_limit_bytes(Bt, tq, n_v, D, dk, dv):
    """Rough per-step VMEM estimate; only raise the limit when needed."""
    bf16, f32 = 2, 4
    in_bytes = 2 * (Bt * tq * D + 2 * Bt * n_v * D) * bf16        # Q/K/V (2x buf)
    w_bytes = 2 * ((2 * D * dk + D * dv) * bf16 + (2 * dk + dv) * f32)
    out_bytes = 2 * (Bt * tq * dv + Bt * tq * n_v) * f32          # ctx/attn (2x buf)
    scratch = (Bt * n_v * dk + Bt * n_v * dv) * bf16              # projected K/V
    est = int((in_bytes + w_bytes + out_bytes + scratch) * 1.5)
    if est <= 32 * 1024 * 1024:
        return None                                                # default is fine
    return min(est, 100 * 1024 * 1024)


def scaled_dot_product_attention(Q, K, V, Wq, bq, Wk, bk, Wv, bv):
    """Q: (B, n_q, D); K, V: (B, n_v, D).

    Wq, Wk: (D, key_size); Wv: (D, value_size); biases are (1, out_features).
    Returns (context (B, n_q, value_size), attention_weights (B, n_q, n_v)).
    """
    B, n_q, D = Q.shape
    _, n_v, _ = K.shape
    dk = Wq.shape[1]
    dv = Wv.shape[1]
    scale = float(1.0 / (dk ** 0.5))

    tq = _choose_q_tile(n_q)
    Bt = _choose_batch_tile(B, n_q, tq, n_v)
    grid = (B // Bt, n_q // tq)

    # Stage activations / weights as bf16 once (halves HBM->VMEM DMA, removes
    # per-step casts).  Fold the softmax scale into the Q projection.
    Qb = Q.astype(jnp.bfloat16)
    Kb = K.astype(jnp.bfloat16)
    Vb = V.astype(jnp.bfloat16)
    Wq_b = (Wq * scale).astype(jnp.bfloat16)
    bq_f = (bq * scale).astype(jnp.float32)
    Wk_b = Wk.astype(jnp.bfloat16)
    bk_f = bk.astype(jnp.float32)
    Wv_b = Wv.astype(jnp.bfloat16)
    bv_f = bv.astype(jnp.float32)

    grid_spec = pltpu.PrefetchScalarGridSpec(
        num_scalar_prefetch=0,
        grid=grid,
        in_specs=[
            pl.BlockSpec((Bt, tq, D), lambda b, q: (b, q, 0)),    # Q
            pl.BlockSpec((Bt, n_v, D), lambda b, q: (b, 0, 0)),   # K (re-DMA'd only when b changes)
            pl.BlockSpec((Bt, n_v, D), lambda b, q: (b, 0, 0)),   # V
            pl.BlockSpec((D, dk), lambda b, q: (0, 0)),           # Wq (scaled)
            pl.BlockSpec((1, dk), lambda b, q: (0, 0)),           # bq (scaled)
            pl.BlockSpec((D, dk), lambda b, q: (0, 0)),           # Wk
            pl.BlockSpec((1, dk), lambda b, q: (0, 0)),           # bk
            pl.BlockSpec((D, dv), lambda b, q: (0, 0)),           # Wv
            pl.BlockSpec((1, dv), lambda b, q: (0, 0)),           # bv
        ],
        out_specs=[
            pl.BlockSpec((Bt, tq, dv), lambda b, q: (b, q, 0)),   # context
            pl.BlockSpec((Bt, tq, n_v), lambda b, q: (b, q, 0)),  # attn weights
        ],
        scratch_shapes=[
            pltpu.VMEM((Bt, n_v, dk), jnp.bfloat16),              # projected K
            pltpu.VMEM((Bt, n_v, dv), jnp.bfloat16),              # projected V
        ],
    )

    out_shape = (
        jax.ShapeDtypeStruct((B, n_q, dv), jnp.float32),
        jax.ShapeDtypeStruct((B, n_q, n_v), jnp.float32),
    )

    vmem_limit = _vmem_limit_bytes(Bt, tq, n_v, D, dk, dv)
    compiler_params = pltpu.CompilerParams(
        # Batch axis parallel (megacore); q axis arbitrary so the K/V scratch
        # written at q==0 is reused in-order by the remaining q steps.
        dimension_semantics=("parallel", "arbitrary"),
        vmem_limit_bytes=vmem_limit,
    )

    return pl.pallas_call(
        _attention_kernel,
        grid_spec=grid_spec,
        out_shape=out_shape,
        compiler_params=compiler_params,
    )(Qb, Kb, Vb, Wq_b, bq_f, Wk_b, bk_f, Wv_b, bv_f)


def _reference(Q, K, V, Wq, bq, Wk, bk, Wv, bv):
    dk = Wq.shape[1]
    q = Q @ Wq + bq
    k = K @ Wk + bk
    v = V @ Wv + bv
    s = jnp.einsum("bqd,bkd->bqk", q, k) / jnp.sqrt(jnp.float32(dk))
    a = jax.nn.softmax(s, axis=-1)
    ctx = jnp.einsum("bqk,bkd->bqd", a, v)
    return ctx, a


if __name__ == "__main__":
    # Module hyperparameters.
    model_size = 32
    key_size = 16
    value_size = 16

    # Input shapes.
    B, n_q, n_v = 2, 8, 8

    key = jax.random.PRNGKey(0)
    kq, kk, kv, kwq, kbq, kwk, kbk, kwv, kbv = jax.random.split(key, 9)

    Q = jax.random.normal(kq, (B, n_q, model_size), dtype=jnp.float32)
    K = jax.random.normal(kk, (B, n_v, model_size), dtype=jnp.float32)
    V = jax.random.normal(kv, (B, n_v, model_size), dtype=jnp.float32)

    # Deterministic parameter init (stored as (in, out) for x @ W + b).
    w_scale = 1.0 / (model_size ** 0.5)
    Wq = jax.random.uniform(kwq, (model_size, key_size), jnp.float32,
                            -w_scale, w_scale)
    bq = jax.random.uniform(kbq, (1, key_size), jnp.float32, -w_scale, w_scale)
    Wk = jax.random.uniform(kwk, (model_size, key_size), jnp.float32,
                            -w_scale, w_scale)
    bk = jax.random.uniform(kbk, (1, key_size), jnp.float32, -w_scale, w_scale)
    Wv = jax.random.uniform(kwv, (model_size, value_size), jnp.float32,
                            -w_scale, w_scale)
    bv = jax.random.uniform(kbv, (1, value_size), jnp.float32, -w_scale, w_scale)

    ctx, attn = scaled_dot_product_attention(Q, K, V, Wq, bq, Wk, bk, Wv, bv)
    jax.block_until_ready((ctx, attn))

    ctx_ref, attn_ref = _reference(Q, K, V, Wq, bq, Wk, bk, Wv, bv)
    assert ctx.shape == (B, n_q, value_size)
    assert attn.shape == (B, n_q, n_v)
    # bf16 MXU operands -> compare at relaxed tolerance.
    assert jnp.allclose(ctx, ctx_ref, atol=3e-2, rtol=3e-2)
    assert jnp.allclose(attn, attn_ref, atol=3e-2, rtol=3e-2)
    # Exact softmax normalization: rows sum to ~1.
    assert jnp.allclose(jnp.sum(attn, axis=-1), 1.0, atol=1e-5)

    print("KERNEL_OK")
</pallas_src>

<mosaic_0001>
module attributes {stable_mosaic.version = 11 : i64} {
  func.func @_attention_kernel(%arg0: i32, %arg1: i32, %arg2: memref<1x8x32xbf16, #tpu.memory_space<vmem>>, %arg3: memref<1x8x32xbf16, #tpu.memory_space<vmem>>, %arg4: memref<1x8x32xbf16, #tpu.memory_space<vmem>>, %arg5: memref<32x16xbf16, #tpu.memory_space<vmem>>, %arg6: memref<1x16xf32, #tpu.memory_space<vmem>>, %arg7: memref<32x16xbf16, #tpu.memory_space<vmem>>, %arg8: memref<1x16xf32, #tpu.memory_space<vmem>>, %arg9: memref<32x16xbf16, #tpu.memory_space<vmem>>, %arg10: memref<1x16xf32, #tpu.memory_space<vmem>>, %arg11: memref<1x8x16xf32, #tpu.memory_space<vmem>>, %arg12: memref<1x8x8xf32, #tpu.memory_space<vmem>>, %arg13: memref<1x8x16xbf16, #tpu.memory_space<vmem>>, %arg14: memref<1x8x16xbf16, #tpu.memory_space<vmem>>) attributes {dimension_semantics = [#tpu.dimension_semantics<parallel>, #tpu.dimension_semantics<arbitrary>], iteration_bounds = array<i64: 2, 1>, scalar_prefetch = 0 : i64, scratch_operands = 2 : i64, tpu.core_type = #tpu.core_type<tc>, window_params = [{transform_indices = @transform_0, window_bounds = array<i64: 1, 8, 32>}, {transform_indices = @transform_1, window_bounds = array<i64: 1, 8, 32>}, {transform_indices = @transform_2, window_bounds = array<i64: 1, 8, 32>}, {pipeline_mode = #tpu.pipeline_mode<synchronous>, transform_indices = @transform_3, window_bounds = array<i64: 32, 16>}, {pipeline_mode = #tpu.pipeline_mode<synchronous>, transform_indices = @transform_4, window_bounds = array<i64: 1, 16>}, {pipeline_mode = #tpu.pipeline_mode<synchronous>, transform_indices = @transform_5, window_bounds = array<i64: 32, 16>}, {pipeline_mode = #tpu.pipeline_mode<synchronous>, transform_indices = @transform_6, window_bounds = array<i64: 1, 16>}, {pipeline_mode = #tpu.pipeline_mode<synchronous>, transform_indices = @transform_7, window_bounds = array<i64: 32, 16>}, {pipeline_mode = #tpu.pipeline_mode<synchronous>, transform_indices = @transform_8, window_bounds = array<i64: 1, 16>}, {transform_indices = @transform_9, window_bounds = array<i64: 1, 8, 16>}, {transform_indices = @transform_10, window_bounds = array<i64: 1, 8, 8>}]} {
    %c0_i32 = arith.constant 0 : i32
    %0 = arith.cmpi eq, %arg1, %c0_i32 : i32
    %1 = arith.extui %0 : i1 to i32
    %c0_i32_0 = arith.constant 0 : i32
    %2 = arith.cmpi ne, %1, %c0_i32_0 : i32
    scf.if %2 {
      %c0_23 = arith.constant 0 : index
      %c0_24 = arith.constant 0 : index
      %c0_25 = arith.constant 0 : index
      %28 = vector.load %arg3[%c0_23, %c0_24, %c0_25] : memref<1x8x32xbf16, #tpu.memory_space<vmem>>, vector<1x8x32xbf16>
      %29 = vector.shape_cast %28 : vector<1x8x32xbf16> to vector<8x32xbf16>
      %c0_26 = arith.constant 0 : index
      %c0_27 = arith.constant 0 : index
      %c0_28 = arith.constant 0 : index
      %30 = vector.load %arg4[%c0_26, %c0_27, %c0_28] : memref<1x8x32xbf16, #tpu.memory_space<vmem>>, vector<1x8x32xbf16>
      %31 = vector.shape_cast %30 : vector<1x8x32xbf16> to vector<8x32xbf16>
      %c0_29 = arith.constant 0 : index
      %c0_30 = arith.constant 0 : index
      %32 = vector.load %arg7[%c0_29, %c0_30] : memref<32x16xbf16, #tpu.memory_space<vmem>>, vector<32x16xbf16>
      %cst_31 = arith.constant dense<0.000000e+00> : vector<8x16xf32>
      %33 = tpu.matmul %29, %32, %cst_31 {dimension_numbers = #tpu.dot_dimension_numbers<[1], [0], [0], [1], [0, 0, 1, 1], [], []>} : vector<8x32xbf16>, vector<32x16xbf16>, vector<8x16xf32> -> vector<8x16xf32>
      %c0_32 = arith.constant 0 : index
      %c0_33 = arith.constant 0 : index
      %34 = vector.load %arg8[%c0_32, %c0_33] : memref<1x16xf32, #tpu.memory_space<vmem>>, vector<1x16xf32>
      %35 = vector.broadcast %34 : vector<1x16xf32> to vector<8x16xf32>
      %36 = arith.addf %33, %35 : vector<8x16xf32>
      %c0_34 = arith.constant 0 : index
      %c0_35 = arith.constant 0 : index
      %37 = vector.load %arg9[%c0_34, %c0_35] : memref<32x16xbf16, #tpu.memory_space<vmem>>, vector<32x16xbf16>
      %cst_36 = arith.constant dense<0.000000e+00> : vector<8x16xf32>
      %38 = tpu.matmul %31, %37, %cst_36 {dimension_numbers = #tpu.dot_dimension_numbers<[1], [0], [0], [1], [0, 0, 1, 1], [], []>} : vector<8x32xbf16>, vector<32x16xbf16>, vector<8x16xf32> -> vector<8x16xf32>
      %c0_37 = arith.constant 0 : index
      %c0_38 = arith.constant 0 : index
      %39 = vector.load %arg10[%c0_37, %c0_38] : memref<1x16xf32, #tpu.memory_space<vmem>>, vector<1x16xf32>
      %40 = vector.broadcast %39 : vector<1x16xf32> to vector<8x16xf32>
      %41 = arith.addf %38, %40 : vector<8x16xf32>
      %42 = vector.shape_cast %36 : vector<8x16xf32> to vector<1x8x16xf32>
      %43 = arith.truncf %42 : vector<1x8x16xf32> to vector<1x8x16xbf16>
      %c0_39 = arith.constant 0 : index
      %c0_40 = arith.constant 0 : index
      %c0_41 = arith.constant 0 : index
      %44 = vector.load %arg13[%c0_39, %c0_40, %c0_41] : memref<1x8x16xbf16, #tpu.memory_space<vmem>>, vector<1x8x16xbf16>
      tpu.vector_store %arg13[%c0_39, %c0_40, %c0_41], %43 {strides = array<i32>} : memref<1x8x16xbf16, #tpu.memory_space<vmem>>, vector<1x8x16xbf16>,
      %45 = vector.shape_cast %41 : vector<8x16xf32> to vector<1x8x16xf32>
      %46 = arith.truncf %45 : vector<1x8x16xf32> to vector<1x8x16xbf16>
      %c0_42 = arith.constant 0 : index
      %c0_43 = arith.constant 0 : index
      %c0_44 = arith.constant 0 : index
      %47 = vector.load %arg14[%c0_42, %c0_43, %c0_44] : memref<1x8x16xbf16, #tpu.memory_space<vmem>>, vector<1x8x16xbf16>
      tpu.vector_store %arg14[%c0_42, %c0_43, %c0_44], %46 {strides = array<i32>} : memref<1x8x16xbf16, #tpu.memory_space<vmem>>, vector<1x8x16xbf16>,
    } else {
    }
    %c0 = arith.constant 0 : index
    %c0_1 = arith.constant 0 : index
    %c0_2 = arith.constant 0 : index
    %3 = vector.load %arg2[%c0, %c0_1, %c0_2] : memref<1x8x32xbf16, #tpu.memory_space<vmem>>, vector<1x8x32xbf16>
    %4 = vector.shape_cast %3 : vector<1x8x32xbf16> to vector<8x32xbf16>
    %c0_3 = arith.constant 0 : index
    %c0_4 = arith.constant 0 : index
    %5 = vector.load %arg5[%c0_3, %c0_4] : memref<32x16xbf16, #tpu.memory_space<vmem>>, vector<32x16xbf16>
    %cst = arith.constant dense<0.000000e+00> : vector<8x16xf32>
    %6 = tpu.matmul %4, %5, %cst {dimension_numbers = #tpu.dot_dimension_numbers<[1], [0], [0], [1], [0, 0, 1, 1], [], []>} : vector<8x32xbf16>, vector<32x16xbf16>, vector<8x16xf32> -> vector<8x16xf32>
    %c0_5 = arith.constant 0 : index
    %c0_6 = arith.constant 0 : index
    %7 = vector.load %arg6[%c0_5, %c0_6] : memref<1x16xf32, #tpu.memory_space<vmem>>, vector<1x16xf32>
    %8 = vector.broadcast %7 : vector<1x16xf32> to vector<8x16xf32>
    %9 = arith.addf %6, %8 : vector<8x16xf32>
    %10 = vector.shape_cast %9 : vector<8x16xf32> to vector<1x8x16xf32>
    %11 = arith.truncf %10 : vector<1x8x16xf32> to vector<1x8x16xbf16>
    %c0_7 = arith.constant 0 : index
    %c0_8 = arith.constant 0 : index
    %c0_9 = arith.constant 0 : index
    %12 = vector.load %arg13[%c0_7, %c0_8, %c0_9] : memref<1x8x16xbf16, #tpu.memory_space<vmem>>, vector<1x8x16xbf16>
    %cst_10 = arith.constant dense<0.000000e+00> : vector<1x8x8xf32>
    %13 = tpu.matmul %11, %12, %cst_10 {dimension_numbers = #tpu.dot_dimension_numbers<[2], [2], [1], [1], [0, 0, 0, 1, 1, 1], [0], [0]>} : vector<1x8x16xbf16>, vector<1x8x16xbf16>, vector<1x8x8xf32> -> vector<1x8x8xf32>
    %cst_11 = arith.constant dense<0xFF800000> : vector<1x8xf32>
    %14 = vector.multi_reduction <maximumf>, %13, %cst_11 [2] : vector<1x8x8xf32> to vector<1x8xf32>
    %15 = vector.shape_cast %14 : vector<1x8xf32> to vector<1x8x1xf32>
    %16 = vector.broadcast %15 : vector<1x8x1xf32> to vector<1x8x8xf32>
    %17 = arith.subf %13, %16 : vector<1x8x8xf32>
    %18 = math.exp %17 : vector<1x8x8xf32>
    %cst_12 = arith.constant dense<0.000000e+00> : vector<1x8xf32>
    %19 = vector.multi_reduction <add>, %18, %cst_12 [2] : vector<1x8x8xf32> to vector<1x8xf32>
    %20 = vector.shape_cast %19 : vector<1x8xf32> to vector<1x8x1xf32>
    %21 = vector.broadcast %20 : vector<1x8x1xf32> to vector<1x8x8xf32>
    %22 = arith.divf %18, %21 : vector<1x8x8xf32>
    %23 = arith.truncf %22 : vector<1x8x8xf32> to vector<1x8x8xbf16>
    %c0_13 = arith.constant 0 : index
    %c0_14 = arith.constant 0 : index
    %c0_15 = arith.constant 0 : index
    %24 = vector.load %arg14[%c0_13, %c0_14, %c0_15] : memref<1x8x16xbf16, #tpu.memory_space<vmem>>, vector<1x8x16xbf16>
    %cst_16 = arith.constant dense<0.000000e+00> : vector<1x8x16xf32>
    %25 = tpu.matmul %23, %24, %cst_16 {dimension_numbers = #tpu.dot_dimension_numbers<[2], [1], [1], [2], [0, 0, 0, 1, 1, 2], [0], [0]>} : vector<1x8x8xbf16>, vector<1x8x16xbf16>, vector<1x8x16xf32> -> vector<1x8x16xf32>
    %c0_17 = arith.constant 0 : index
    %c0_18 = arith.constant 0 : index
    %c0_19 = arith.constant 0 : index
    %26 = vector.load %arg11[%c0_17, %c0_18, %c0_19] : memref<1x8x16xf32, #tpu.memory_space<vmem>>, vector<1x8x16xf32>
    tpu.vector_store %arg11[%c0_17, %c0_18, %c0_19], %25 {strides = array<i32>} : memref<1x8x16xf32, #tpu.memory_space<vmem>>, vector<1x8x16xf32>,
    %c0_20 = arith.constant 0 : index
    %c0_21 = arith.constant 0 : index
    %c0_22 = arith.constant 0 : index
    %27 = vector.load %arg12[%c0_20, %c0_21, %c0_22] : memref<1x8x8xf32, #tpu.memory_space<vmem>>, vector<1x8x8xf32>
    tpu.vector_store %arg12[%c0_20, %c0_21, %c0_22], %22 {strides = array<i32>} : memref<1x8x8xf32, #tpu.memory_space<vmem>>, vector<1x8x8xf32>,
    return
  }
  func.func @transform_0(%arg0: i32, %arg1: i32) -> (i32, i32, i32) {
    %c0_i32 = arith.constant 0 : i32
    %c0_i32_0 = arith.constant 0 : i32
    return %arg0, %arg1, %c0_i32 : i32, i32, i32
  }
  func.func @transform_1(%arg0: i32, %arg1: i32) -> (i32, i32, i32) {
    %c0_i32 = arith.constant 0 : i32
    %c0_i32_0 = arith.constant 0 : i32
    %c0_i32_1 = arith.constant 0 : i32
    return %arg0, %c0_i32, %c0_i32_0 : i32, i32, i32
  }
  func.func @transform_2(%arg0: i32, %arg1: i32) -> (i32, i32, i32) {
    %c0_i32 = arith.constant 0 : i32
    %c0_i32_0 = arith.constant 0 : i32
    %c0_i32_1 = arith.constant 0 : i32
    return %arg0, %c0_i32, %c0_i32_0 : i32, i32, i32
  }
  func.func @transform_3(%arg0: i32, %arg1: i32) -> (i32, i32) {
    %c0_i32 = arith.constant 0 : i32
    %c0_i32_0 = arith.constant 0 : i32
    %c0_i32_1 = arith.constant 0 : i32
    return %c0_i32, %c0_i32_0 : i32, i32
  }
  func.func @transform_4(%arg0: i32, %arg1: i32) -> (i32, i32) {
    %c0_i32 = arith.constant 0 : i32
    %c0_i32_0 = arith.constant 0 : i32
    %c0_i32_1 = arith.constant 0 : i32
    return %c0_i32, %c0_i32_0 : i32, i32
  }
  func.func @transform_5(%arg0: i32, %arg1: i32) -> (i32, i32) {
    %c0_i32 = arith.constant 0 : i32
    %c0_i32_0 = arith.constant 0 : i32
    %c0_i32_1 = arith.constant 0 : i32
    return %c0_i32, %c0_i32_0 : i32, i32
  }
  func.func @transform_6(%arg0: i32, %arg1: i32) -> (i32, i32) {
    %c0_i32 = arith.constant 0 : i32
    %c0_i32_0 = arith.constant 0 : i32
    %c0_i32_1 = arith.constant 0 : i32
    return %c0_i32, %c0_i32_0 : i32, i32
  }
  func.func @transform_7(%arg0: i32, %arg1: i32) -> (i32, i32) {
    %c0_i32 = arith.constant 0 : i32
    %c0_i32_0 = arith.constant 0 : i32
    %c0_i32_1 = arith.constant 0 : i32
    return %c0_i32, %c0_i32_0 : i32, i32
  }
  func.func @transform_8(%arg0: i32, %arg1: i32) -> (i32, i32) {
    %c0_i32 = arith.constant 0 : i32
    %c0_i32_0 = arith.constant 0 : i32
    %c0_i32_1 = arith.constant 0 : i32
    return %c0_i32, %c0_i32_0 : i32, i32
  }
  func.func @transform_9(%arg0: i32, %arg1: i32) -> (i32, i32, i32) {
    %c0_i32 = arith.constant 0 : i32
    %c0_i32_0 = arith.constant 0 : i32
    return %arg0, %arg1, %c0_i32 : i32, i32, i32
  }
  func.func @transform_10(%arg0: i32, %arg1: i32) -> (i32, i32, i32) {
    %c0_i32 = arith.constant 0 : i32
    %c0_i32_0 = arith.constant 0 : i32
    return %arg0, %arg1, %c0_i32 : i32, i32, i32
  }
}

</mosaic_0001>

<bundles_post_ra>
// kernel: tpu_custom_call.1
= control target key start
LH: loop header
LB: loop body
LE: loop exit
PB: predicated region body
PF: predicated region fallthrough
CT: control target
= control target key end

     0   :  { %s1241_s0 = inlined_call_operand.vmem [shape: bf16[2,8,32], index: 0, kind: input, shape index: {}]   ;;  %s1242_s1 = inlined_call_operand.vmem [shape: bf16[2,8,32], index: 1, kind: input, shape index: {}]   ;;  %s1243_s2 = inlined_call_operand.vmem [shape: bf16[2,8,32], index: 2, kind: input, shape index: {}]   ;;  %s1244_s3 = inlined_call_operand.vmem [shape: bf16[32,16], index: 3, kind: input, shape index: {}]   ;;  %s1245_s4 = inlined_call_operand.vmem [shape: f32[1,16], index: 4, kind: input, shape index: {}]   ;;  %s1246_s5 = inlined_call_operand.vmem [shape: bf16[32,16], index: 5, kind: input, shape index: {}]   ;;  %s1247_s6 = inlined_call_operand.vmem [shape: f32[1,16], index: 6, kind: input, shape index: {}]   ;;  %s1248_s7 = inlined_call_operand.vmem [shape: bf16[32,16], index: 7, kind: input, shape index: {}]   ;;  %s1249_s8 = inlined_call_operand.vmem [shape: f32[1,16], index: 8, kind: input, shape index: {}]   ;;  %s1250_s9 = inlined_call_operand.hbm [shape: f32[2,8,16], index: 9, kind: output, shape index: {0}]   ;;  %s1251_s10 = inlined_call_operand.hbm [shape: f32[2,8,8], index: 10, kind: output, shape index: {1}]  }
   0x1   :  { %1254 = sst [smem:[#allocation11_spill]] %s1241_s0 }
   0x2   :  { %1255 = sst [smem:[#allocation12_spill]] %s1242_s1 }
   0x3   :  { %1256 = sst [smem:[#allocation13_spill]] %s1243_s2 }
   0x4   :  { %1257 = sst [smem:[#allocation14_spill]] %s1244_s3 }
   0x5   :  { %1258 = sst [smem:[#allocation15_spill]] %s1245_s4 }
   0x6   :  { %16 = vsyncpa [#allocation5], 0 }
   0x7   :  { %18 = vsyncpa [#allocation5 + $0x1], 0 }
   0x8   :  { %19 = vsyncpa [#allocation7], 0 }
   0x9   :  { %21 = vsyncpa [#allocation7 + $0x1], 0  ;;  %s1072_s13 = smov 0   ;;  %s1074_s14 = smov 0  }
   0xa   :  { %s1076_s15 = smov 0   ;;  %s1078_s16 = smov 0  }
   0xb   :  { %s1080_s17 = smov 0   ;;  %s1082_s18 = smov 0  }
   0xc LB: > { %s787_s19 = sadd.s32 4294967295, %s1015_s18   ;;  %s788_s20 = sadd.s32 4294967294, %s1015_s18   ;;  %s1015_s18 = sphi %s1082_s18, %s27_s18   ;;  %s1011_s17 = sphi %s1080_s17, %s1273_s17   ;;  %s1007_s16 = sphi %s1078_s16, %s1272_s16   ;;  %s1003_s15 = sphi %s1076_s15, %s1271_s15   ;;  %s999_s14 = sphi %s1074_s14, %s1270_s14   ;;  %s995_s13 = sphi %s1072_s13, %s1269_s13  }
   0xd   : > { %s39_s21 = sadd.s32 1, %s1011_s17  ;;  %s254_s22 = sadd.s32 1, %s1003_s15 }
   0xe   : > { %p41_p0 = scmp.ge.s32.totalorder %s39_s21, 2  ;;  %p264_p1 = scmp.ne.s32.totalorder %s1003_s15, %s999_s14 }
   0xf   : > { %p265_p2 = scmp.eq.s32.totalorder %s787_s19, 1  ;;  %p270_p3 = scmp.ne.s32.totalorder %s999_s14, %s995_s13 }
  0x10   : > { %s1275_s21 = smov (%p41_p0, %s39_s21), 0  ;;  %p271_p5 = scmp.eq.s32.totalorder %s788_s20, 1 }
  0x11   : > { %1259 = sst [smem:[#allocation10_spill]] %s1275_s21  ;;  %p1112_p4 = por %p265_p2, %p264_p1 }
  0x12   : > { %s249_s24 = ssub.s32 %s1011_s17, %s1275_s21  ;;  %p791_p6 = scmp.ge.s32.totalorder %s1015_s18, 1 }
  0x13   : > { %p252_p7 = scmp.eq.s32.totalorder %s249_s24, 0  ;;  %p1119_p8 = por %p271_p5, %p270_p3 }
  0x14   : > { %p359_p9 = scmp.lt.s32.totalorder %s1015_s18, 3 }
  0x15   : > { %s1125_s26 = scalar_select %p252_p7, %s1003_s15, %s254_s22  }
  0x16   : > { %p360_p10 = pnand %p791_p6, %p359_p9 }
  0x17   : > { %s1262_s3 = sld [smem:[#allocation14_spill]] (!%p360_p10)  ;;  %p412_p11 = scmp.lt.s32.totalorder (!%p360_p10), %s1007_s16, 1 }
  0x18   : > { %363 = sbr.rel (%p360_p10) target bundleno = 715 (0x2cb), region = 56  ;;  %s1263_s1 = sld [smem:[#allocation12_spill]] (!%p360_p10) }
  0x19   : > { %s1264_s0 = sld [smem:[#allocation11_spill]] (!%p360_p10)  ;;  %s828_s27 = sshll.u32 (!%p360_p10), %s1007_s16, 3 }
  0x1a   : > { %s1265_s4 = sld [smem:[#allocation15_spill]] (!%p360_p10)  ;;  %s653_s30 = scalar_lea.hbm (!%p360_p10), %s1251_s10, %s828_s27 }
  0x1b   : > { %s1266_s2 = sld [smem:[#allocation13_spill]] (!%p360_p10) }
  0x1d   : > { %v833_v0 = vld [vmem:[%s1246_s5 + $0x8] sm:$0xff]  ;;  %v832_v2 = vld [vmem:[%s1246_s5] sm:$0xff]  ;;  %s413_s22 = scalar_select %p412_p11, %s1007_s16, 1  ;;  %vm454_vm0 = vcmask 261120   ;;  %vm508_vm1 = vcmask 125952   ;;  %vm552_vm2 = vcmask 130048  }
  0x1e   : > { %v837_v1 = vld [vmem:[%s1262_s3 + $0x8] sm:$0xff]  ;;  %464 = vmatpush.bf16.msra.mxu0 %v833_v0  ;;  %v836_v3 = vld [vmem:[%s1262_s3] sm:$0xff]  ;;  %vm572_vm3 = vcmask 64512   ;;  %vm602_vm4 = vcmask 1043456   ;;  %s925_s16 = scalar_lea.hbm %s1251_s10, 16 }
  0x1f   : > { %543 = vmatpush.bf16.msra.mxu2 %v837_v1  ;;  %s1141_s24 = sshll.u32 %s413_s22, 2  ;;  %v898_v6 = vld [vmem:[%s1247_s6] ss:$0 sm:$0xff]  ;;  %v835_v18 = vld [vmem:[%s1248_s7 + $0x8] sm:$0xff] }
  0x20   : > { %s422_s29 = scalar_lea.vmem %s1263_s1, %s1141_s24  ;;  %s418_s11 = scalar_lea.vmem %s1264_s0, %s1141_s24  ;;  %v899_v12 = vld [vmem:[%s1265_s4] ss:$0 sm:$0xff]  ;;  %500 = vmatpush.bf16.msra.mxu1 %v835_v18 }
  0x21   : > { %v432_v4 = vld [vmem:[%s422_s29] sm:$0xf]  ;;  %s426_s12 = scalar_lea.vmem %s1266_s2, %s1141_s24  ;;  %s1180_s24 = sand.u32 1, %s999_s14  }
  0x22   : > { %465 = vmatpush.bf16.msra.mxu0 %v832_v2  ;;  %v512_v5 = vld [vmem:[%s418_s11] sm:$0xf]  ;;  %s1253_s20 = sshll.u32 %s1180_s24, 3  ;;  %s627_s19 = scalar_lea.sflag [#allocation7], %s1180_s24 }
  0x23   : > { %544 = vmatpush.bf16.msra.mxu2 %v836_v3  ;;  %v834_v19 = vld [vmem:[%s1248_s7] sm:$0xff]  ;;  %s411_s22 = scalar_lea.vmem [#allocation6], %s1253_s20 }
  0x24   : > { %501 = vmatpush.bf16.msra.mxu1 %v834_v19  ;;  %v433_v20 = vld [vmem:[%s426_s12] sm:$0xf]  ;;  %s655_s11 = sshll.u32 %s411_s22, 4  ;;  %s657_s12 = sshll.u32 %s653_s30, 4  ;;  %s656_s11 = int_to_ptr.vmem [resolvable:$true] %s655_s11  ;;  %s658_s12 = int_to_ptr.hbm [resolvable:$true] %s657_s12 }
  0x25   : > { %805 = vmatmul.msk.bf16.vlgmr.msra.gmra.mxu0 %vm454_vm0, %v432_v4  ;;  %v900_v24 = vld [vmem:[%s1249_s8] ss:$0 sm:$0xff]  ;;  %s919_s21 = sshra.s32 %s658_s12, 4  ;;  %s920_s21 = int_to_ptr.hbm [resolvable:$true] %s919_s21 }
  0x26   : > { %823 = vmatmul.msk.bf16.vlgmr.msra.gmra.mxu2 %vm454_vm0, %v512_v5  ;;  %s921_s0 = scalar_lea.hbm %s920_s21, 8  ;;  %p926_p1 = scmp.lt.s32.totalorder %s920_s21, %s1251_s10 }
  0x27   : > { %814 = vmatmul.msk.bf16.vlgmr.msra.gmra.mxu1 %vm454_vm0, %v433_v20  ;;  %p922_p12 = scmp.ne.s32.totalorder %s920_s21, %s921_s0  ;;  %p927_p2 = scmp.lt.s32.totalorder %s925_s16, %s921_s0 }
  0x29   : > { %p923_p13 = pnand %p922_p12, %p1112_p4  ;;  %p928_p3 = por %p927_p2, %p926_p1 }
  0x2b   : > { %p924_p0 = pneg %p923_p13 }
  0x2d   : > { %p929_p5 = pnand %p928_p3, %p924_p0 }
  0xa2   : > { %v467_v7 = vpop.f32.mrf.mxu0 }
  0xa3   : > { %v468_v8 = vadd.f32 %v898_v6, %v467_v7 }
  0xa4   : > { %v503_v25 = vpop.f32.mrf.mxu1 }
  0xa5   : > { %v507_v9 = vpack.c.bf16 %v468_v8, %v468_v8  ;;  %v504_v26 = vadd.f32 %v900_v24, %v503_v25 }
  0xa7   : > { %509 = vst.msk [vmem:[#allocation2] sm:$0xf] %vm508_vm1, %v507_v9  ;;  %v510_v27 = vpack.c.bf16 %v504_v26, %v504_v26 }
  0xa9   : > { %v546_v10 = vpop.f32.mrf.mxu2  ;;  %511 = vst.msk [vmem:[#allocation3] sm:$0xf] %vm508_vm1, %v510_v27 }
  0xaa   : > { %v469_v11 = vpop.f32.mrf.mxu0  ;;  %v547_v14 = vadd.f32 %v899_v12, %v546_v10 }
  0xac   : > { %v550_v17 = vpack.c.bf16 %v547_v14, %v547_v14  ;;  %v505_v30 = vpop.f32.mrf.mxu1 }
  0xae   : > { %v551_v13 = vld [vmem:[#allocation2] sm:$0xf] }
  0xaf   : > { %v557_v15 = vsel %vm552_vm2, %v551_v13, 0 }
  0xb0   : > { %566 = vmatpush.bf16.xpose.msra.mxu3 %v557_v15  ;;  %v598_v34 = vld [vmem:[#allocation3] sm:$0xf] }
  0xb1   : > { %v548_v16 = vpop.f32.mrf.mxu2  ;;  %v604_v35 = vsel %vm602_vm4, %v598_v34, 0 }
  0xb2   : > { %613 = vmatpush.bf16.msrb.mxu0 %v604_v35 }
  0xb7   : > { %824 = vmatmul.msk.bf16.vlgmr.msra.gmra.mxu3 %vm552_vm2, %v550_v17 }
 0x13a   : > { %v568_v21 = vpop.f32.mrf.mxu3 }
 0x13b   : > { %v573_v22 = vsel %vm572_vm3, %v568_v21, -inf }
 0x13c   : > { %574 = vmax.xlane.f32.xlu0 %v573_v22 }
 0x142   : > { %v570_v23 = vpop.f32.mrf.mxu3 }
 0x1af   : > { %v575_v28 = vpop.xlane.xlu0 %574 }
 0x1b0   : > { %v576_v29 = vsub.f32 %v568_v21, %v575_v28 }
 0x1b2   : > { %v577_v31 = vmul.f32 1.442695, %v576_v29 }
 0x1b4   : > { %901 = vpow2.f32 %v577_v31 }
 0x1ba   : > { %v902_v32 = vpop.eup %901 }
 0x1bb   : > { %v579_v33 = vsel %vm572_vm3, %v902_v32, 0.0 }
 0x1bc   : > { %580 = vadd.xlane.f32.xlu0 %v579_v33 }
 0x22f   : > { %v581_v36 = vpop.xlane.xlu0 %580 }
 0x230   : > { %903 = vrcp.f32 %v581_v36  ;;  %v593_v40 = vand.u32 2147483648, %v581_v36  ;;  %v591_v42 = vand.u32 2147483647, %v581_v36  ;;  %vm587_vm6 = vweird.f32 %v581_v36 }
 0x232   : > { %v594_v44 = vor.u32 1.1754944e-38, %v593_v40  ;;  %vm592_vm8 = vcmp.eq.f32.partialorder %v591_v42, 8.507059e+37 }
 0x236   : > { %v904_v37 = vpop.eup %903 }
 0x237   : > { %v583_v38 = vmul.f32 %v904_v37, %v581_v36  ;;  %vm588_vm5 = vweird.f32 %v904_v37 }
 0x238   : > { %vm589_vm7 = vmor %vm587_vm6, %vm588_vm5 }
 0x239   : > { %v584_v39 = vsub.f32 1.0, %v583_v38 }
 0x23b   : > { %v585_v41 = vmul.f32 %v904_v37, %v584_v39 }
 0x23d   : > { %v586_v43 = vadd.f32 %v904_v37, %v585_v41 }
 0x23f   : > { %v590_v45 = vsel %vm589_vm7, %v904_v37, %v586_v43 }
 0x240   : > { %v595_v46 = vsel %vm592_vm8, %v594_v44, %v590_v45 }
 0x241   : > { %v596_v47 = vmul.f32 %v902_v32, %v595_v46 }
 0x243   : > { %v597_v48 = vpack.c.bf16 %v596_v47, %v596_v47  ;;  %620 = vst.msk [vmem:[%s411_s22] sm:$0xff] %vm572_vm3, %v596_v47 }
 0x245   : > { %825 = vmatmul.msk.bf16.vlgmr.msrb.gmra.mxu0 %vm572_vm3, %v597_v48 }
 0x246   : > { %932 = shalt.err (!%p929_p5)
}
 0x247   : > { %839 = dma.vmem_to_hbm [thread:$0]  (%p1112_p4), %s656_s11, 128, %s658_s12, %s627_s19  }
 0x248   : > { %s638_s29 = scalar_lea.hbm %s1250_s9, %s828_s27  ;;  %s1267_s1 = sshll.u32 %s1180_s24, 3 }
 0x249   : > { %s404_s20 = scalar_lea.vmem [#allocation4], %s1267_s1  ;;  %s642_s4 = sshll.u32 %s638_s29, 4  ;;  %s643_s4 = int_to_ptr.hbm [resolvable:$true] %s642_s4 }
 0x24a   : > { %s640_s30 = sshll.u32 %s404_s20, 4  ;;  %s622_s0 = scalar_lea.sflag [#allocation5], %s1180_s24  ;;  %s641_s30 = int_to_ptr.vmem [resolvable:$true] %s640_s30 }
 0x24b   : > { %s947_s2 = sshra.s32 %s643_s4, 4  ;;  %s953_s27 = scalar_lea.hbm %s1250_s9, 16  ;;  %s948_s2 = int_to_ptr.hbm [resolvable:$true] %s947_s2 }
 0x24c   : > { %s949_s3 = scalar_lea.hbm %s948_s2, 8  ;;  %p954_p10 = scmp.lt.s32.totalorder %s948_s2, %s1250_s9 }
 0x24d   : > { %p950_p6 = scmp.ne.s32.totalorder %s948_s2, %s949_s3  ;;  %p955_p11 = scmp.lt.s32.totalorder %s953_s27, %s949_s3 }
 0x24f   : > { %p951_p7 = pnand %p950_p6, %p1112_p4  ;;  %p956_p12 = por %p955_p11, %p954_p10 }
 0x251   : > { %p952_p9 = pneg %p951_p7 }
 0x253   : > { %p957_p13 = pnand %p956_p12, %p952_p9 }
 0x2c2   : > { %v615_v49 = vpop.f32.mrf.mxu0 }
 0x2c3   : > { %619 = vst.msk [vmem:[%s404_s20] sm:$0xff] %vm552_vm2, %v615_v49 }
 0x2c4   : > { %960 = shalt.err (!%p957_p13)
}
 0x2c5   : > { %838 = dma.vmem_to_hbm [thread:$0]  (%p1112_p4), %s641_s30, 128, %s643_s4, %s622_s0  }
 0x2ca   : > { %v617_v50 = vpop.f32.mrf.mxu0 }
 0x2cb PF: > { %p849_p0 = scmp.ge.s32.totalorder %s1015_s18, 2  ;;  %s669_s24 = sand.u32 1, %s995_s13  }
 0x2cc   : > { %s670_s16 = scalar_lea.sflag [#allocation5], %s669_s24 }
 0x2cd   : > { %p843_p1 = pnand %p849_p0, %p1119_p8 }
 0x2cf   : > { %p844_p2 = pneg %p843_p1 }
 0x2d1   : > { %986 = dma.done.wait (%p844_p2), %s670_s16, 128  }
 0x2d2   : > { %988 = vsyncadd (%p844_p2), %s670_s16, 4294967168  ;;  %s680_s22 = scalar_lea.sflag [#allocation7], %s669_s24 }
 0x2d3   : > { %990 = dma.done.wait (%p844_p2), %s680_s22, 128  }
 0x2d4   : > { %992 = vsyncadd (%p844_p2), %s680_s22, 4294967168  ;;  %s27_s18 = sadd.s32 1, %s1015_s18   ;;  %s1268_s4 = sld [smem:[#allocation10_spill]] }
 0x2d5   : > { %p24_p3 = scmp.ge.s32.totalorder %s27_s18, 4   ;;  %s1269_s13 = smov %s999_s14 }
 0x2d6   : > { %s1270_s14 = smov %s1003_s15  ;;  %s1271_s15 = smov %s1125_s26 }
 0x2d7   : > { %s1272_s16 = smov %s1011_s17  ;;  %26 = sbr.rel (!%p24_p3) target bundleno = 12 (0xc), region = 118 }
 0x2da   : > { %s1273_s17 = smov %s1268_s4 }
 0x2dc   :  { %686 = vsyncpa [#allocation5], 1 }
 0x2dd   :  { %688 = vsyncpa [#allocation5 + $0x1], 1 }
 0x2de   :  { %689 = vsyncpa [#allocation7], 1 }
 0x2df   :  { %691 = vsyncpa [#allocation7 + $0x1], 1 }

</bundles_post_ra>
